<compile_context>
chip_gen: v7x
topology: tpu7x:2x2x1
jax: 0.10.0
libtpu: 0.0.40
codegen_flags: <defaults>
</compile_context>

<pallas_src>
import jax
import jax.numpy as jnp
from jax.experimental import pallas as pl
from jax.experimental.pallas import tpu as pltpu

_LANES = 128


def soft_target_cross_entropy_pallas(x, target, reduction="mean",
                                     block_rows=1024, block_classes=None,
                                     vmem_budget_bytes=40 << 20):
    """SoftTargetCrossEntropy forward (reduction='mean') as a Pallas TPU kernel."""
    assert x.shape == target.shape and x.ndim == 2, (x.shape, target.shape)
    if reduction != "mean":
        # TODO(synk): per-row loss output (the non-'mean' branch) is not implemented.
        raise NotImplementedError("only reduction='mean' is implemented")

    n, c = x.shape
    x_item = jnp.dtype(x.dtype).itemsize
    t_item = jnp.dtype(target.dtype).itemsize

    # Live VMEM per kernel row: 2 pipeline buffers per input + ~3 f32 (tm, cols) temps.
    def bytes_per_row(cols):
        return cols * (2 * x_item + 2 * t_item + 3 * 4)

    # Decide whether to tile the class axis (forced via block_classes, or auto when a
    # single (tm, C) block would force tiny row tiles / overflow VMEM).
    use_class_tiling = block_classes is not None and block_classes < c
    if not use_class_tiling and bytes_per_row(c) * 64 > vmem_budget_bytes:
        use_class_tiling = True
    tc = c
    if use_class_tiling:
        if block_classes is not None:
            tc = max(128, (min(block_classes, c) // 128) * 128)
        else:
            tc = 2048
            while tc > 128 and bytes_per_row(tc) * 256 > vmem_budget_bytes:
                tc //= 2

    cols = tc if use_class_tiling else c
    max_rows = max(8, vmem_budget_bytes // max(1, bytes_per_row(cols)))
    n_r8 = ((n + 7) // 8) * 8
    tm = max(8, (min(block_rows, max_rows, n_r8) // 8) * 8)
    grid_m = -(-n // tm)

    # Explicit scoped-VMEM limit consistent with the tile choice; stay <= ~48 MiB so the
    # same setting is safe on v7x (64 MiB/TC) while raising v5e/v6e above their defaults.
    vmem_limit = int(min(48 << 20, max(32 << 20, vmem_budget_bytes + (8 << 20))))

    out_shape = jax.ShapeDtypeStruct((grid_m, _LANES), jnp.float32)

    if not use_class_tiling:
        # --- Single-pass path: one (tm, C) block per grid step. ---
        def kernel(x_ref, t_ref, out_ref):
            i = pl.program_id(0)
            xb = x_ref[...].astype(jnp.float32)                    # (tm, C)
            tb = t_ref[...].astype(jnp.float32)                    # (tm, C)
            m = jnp.max(xb, axis=-1, keepdims=True)                # (tm, 1)
            se = jnp.sum(jnp.exp(xb - m), axis=-1, keepdims=True)  # (tm, 1)
            lse = m + jnp.log(se)                                  # (tm, 1)
            t_sum = jnp.sum(tb, axis=-1, keepdims=True)            # (tm, 1)
            tx_sum = jnp.sum(tb * xb, axis=-1, keepdims=True)      # (tm, 1)
            row_loss = lse * t_sum - tx_sum                        # (tm, 1)
            # Ragged tail rows (garbage reads): select, not multiply, so NaN/Inf
            # from garbage rows cannot poison the block partial sum.
            row_ids = i * tm + jax.lax.broadcasted_iota(jnp.int32, (tm, 1), 0)
            row_loss = jnp.where(row_ids < n, row_loss, 0.0)
            partial = jnp.sum(row_loss, axis=0, keepdims=True)     # (1, 1)
            out_ref[...] = jnp.broadcast_to(partial, out_ref.shape)

        partials = pl.pallas_call(
            kernel,
            out_shape=out_shape,
            grid_spec=pltpu.PrefetchScalarGridSpec(
                num_scalar_prefetch=0,
                grid=(grid_m,),
                in_specs=[pl.BlockSpec((tm, c), lambda i: (i, 0)),
                          pl.BlockSpec((tm, c), lambda i: (i, 0))],
                out_specs=pl.BlockSpec((1, _LANES), lambda i: (i, 0)),
            ),
            compiler_params=pltpu.CompilerParams(
                dimension_semantics=("parallel",),
                vmem_limit_bytes=vmem_limit,
            ),
        )(x, target)
    else:
        # --- Class-tiled online-softmax path for large C. ---
        grid_k = -(-c // tc)

        def kernel(x_ref, t_ref, out_ref, m_sc, s_sc, ts_sc, tx_sc):
            i = pl.program_id(0)
            k = pl.program_id(1)

            @pl.when(k == 0)
            def _():
                m_sc[...] = jnp.full_like(m_sc, -jnp.inf)
                s_sc[...] = jnp.zeros_like(s_sc)
                ts_sc[...] = jnp.zeros_like(ts_sc)
                tx_sc[...] = jnp.zeros_like(tx_sc)

            xb = x_ref[...].astype(jnp.float32)                    # (tm, tc)
            tb = t_ref[...].astype(jnp.float32)                    # (tm, tc)

            # Ragged class tail: mask out-of-range columns.
            col_ids = k * tc + jax.lax.broadcasted_iota(jnp.int32, (tm, tc), 1)
            col_ok = col_ids < c
            x_m = jnp.where(col_ok, xb, -jnp.inf)

            m_prev = m_sc[...]
            m_new = jnp.maximum(m_prev, jnp.max(x_m, axis=-1, keepdims=True))
            alpha = jnp.exp(m_prev - m_new)
            s_sc[...] = s_sc[...] * alpha + jnp.sum(jnp.exp(x_m - m_new),
                                                    axis=-1, keepdims=True)
            ts_sc[...] = ts_sc[...] + jnp.sum(jnp.where(col_ok, tb, 0.0),
                                              axis=-1, keepdims=True)
            tx_sc[...] = tx_sc[...] + jnp.sum(jnp.where(col_ok, tb * xb, 0.0),
                                              axis=-1, keepdims=True)
            m_sc[...] = m_new

            @pl.when(k == pl.num_programs(1) - 1)
            def _():
                lse = m_sc[...] + jnp.log(s_sc[...])                # (tm, 1)
                row_loss = lse * ts_sc[...] - tx_sc[...]            # (tm, 1)
                row_ids = i * tm + jax.lax.broadcasted_iota(jnp.int32, (tm, 1), 0)
                row_loss = jnp.where(row_ids < n, row_loss, 0.0)
                partial = jnp.sum(row_loss, axis=0, keepdims=True)  # (1, 1)
                out_ref[...] = jnp.broadcast_to(partial, out_ref.shape)

        partials = pl.pallas_call(
            kernel,
            out_shape=out_shape,
            grid_spec=pltpu.PrefetchScalarGridSpec(
                num_scalar_prefetch=0,
                grid=(grid_m, grid_k),
                in_specs=[pl.BlockSpec((tm, tc), lambda i, k: (i, k)),
                          pl.BlockSpec((tm, tc), lambda i, k: (i, k))],
                out_specs=pl.BlockSpec((1, _LANES), lambda i, k: (i, 0)),
                scratch_shapes=[pltpu.VMEM((tm, 1), jnp.float32)
                                for _ in range(4)],
            ),
            compiler_params=pltpu.CompilerParams(
                dimension_semantics=("parallel", "arbitrary"),
                vmem_limit_bytes=vmem_limit,
            ),
        )(x, target)

    loss_sum = jnp.sum(partials[:, 0])
    return loss_sum / jnp.float32(n)


def soft_target_cross_entropy_ref(x, target):
    """Pure-JAX reference mirroring the PyTorch forward (reduction='mean')."""
    logp = jax.nn.log_softmax(x.astype(jnp.float32), axis=-1)
    loss = -jnp.sum(target.astype(jnp.float32) * logp, axis=-1)
    return jnp.mean(loss)


if __name__ == "__main__":
    key = jax.random.PRNGKey(0)
    k1, k2, k3, k4, k5, k6 = jax.random.split(key, 6)

    # 1) Small single-block case: x = logits (batch, classes), target = soft distribution.
    N, C = 8, 32
    x = jax.random.normal(k1, (N, C), dtype=jnp.float32)
    t = jax.nn.softmax(jax.random.normal(k2, (N, C), dtype=jnp.float32), axis=-1)
    out = soft_target_cross_entropy_pallas(x, t)
    jax.block_until_ready(out)
    ref = soft_target_cross_entropy_ref(x, t)
    assert jnp.allclose(out, ref, rtol=1e-5, atol=1e-5), (out, ref)

    # 2) Multi-block + ragged row tail (no wrapper-side padding; in-kernel row mask).
    N2, C2 = 37, 256
    x2 = jax.random.normal(k3, (N2, C2), dtype=jnp.float32)
    t2 = jax.nn.softmax(jax.random.normal(k4, (N2, C2), dtype=jnp.float32), axis=-1)
    out2 = soft_target_cross_entropy_pallas(x2, t2, block_rows=16)
    jax.block_until_ready(out2)
    ref2 = soft_target_cross_entropy_ref(x2, t2)
    assert jnp.allclose(out2, ref2, rtol=1e-5, atol=1e-5), (out2, ref2)

    # 3) Class-tiled online-softmax path (ragged rows AND ragged class tail).
    N3, C3 = 37, 200
    x3 = jax.random.normal(k5, (N3, C3), dtype=jnp.float32)
    t3 = jax.nn.softmax(jax.random.normal(k6, (N3, C3), dtype=jnp.float32), axis=-1)
    out3 = soft_target_cross_entropy_pallas(x3, t3, block_rows=16, block_classes=128)
    jax.block_until_ready(out3)
    ref3 = soft_target_cross_entropy_ref(x3, t3)
    assert jnp.allclose(out3, ref3, rtol=1e-5, atol=1e-5), (out3, ref3)

    print("KERNEL_OK")
</pallas_src>

<mosaic_0001>
module attributes {stable_mosaic.version = 11 : i64} {
  func.func @kernel(%arg0: i32, %arg1: memref<8x32xf32, #tpu.memory_space<vmem>>, %arg2: memref<8x32xf32, #tpu.memory_space<vmem>>, %arg3: memref<1x128xf32, #tpu.memory_space<vmem>>) attributes {dimension_semantics = [#tpu.dimension_semantics<parallel>], iteration_bounds = array<i64: 1>, scalar_prefetch = 0 : i64, scratch_operands = 0 : i64, tpu.core_type = #tpu.core_type<tc>, window_params = [{transform_indices = @transform_0, window_bounds = array<i64: 8, 32>}, {transform_indices = @transform_1, window_bounds = array<i64: 8, 32>}, {transform_indices = @transform_2, window_bounds = array<i64: 1, 128>}]} {
    %c0 = arith.constant 0 : index
    %c0_0 = arith.constant 0 : index
    %0 = vector.load %arg1[%c0, %c0_0] : memref<8x32xf32, #tpu.memory_space<vmem>>, vector<8x32xf32>
    %c0_1 = arith.constant 0 : index
    %c0_2 = arith.constant 0 : index
    %1 = vector.load %arg2[%c0_1, %c0_2] : memref<8x32xf32, #tpu.memory_space<vmem>>, vector<8x32xf32>
    %cst = arith.constant dense<0xFF800000> : vector<8xf32>
    %2 = vector.multi_reduction <maximumf>, %0, %cst [1] : vector<8x32xf32> to vector<8xf32>
    %3 = vector.shape_cast %2 : vector<8xf32> to vector<8x1xf32>
    %4 = vector.broadcast %3 : vector<8x1xf32> to vector<8x32xf32>
    %5 = arith.subf %0, %4 : vector<8x32xf32>
    %6 = math.exp %5 : vector<8x32xf32>
    %cst_3 = arith.constant dense<0.000000e+00> : vector<8xf32>
    %7 = vector.multi_reduction <add>, %6, %cst_3 [1] : vector<8x32xf32> to vector<8xf32>
    %8 = vector.shape_cast %7 : vector<8xf32> to vector<8x1xf32>
    %9 = math.log %8 : vector<8x1xf32>
    %10 = arith.addf %3, %9 : vector<8x1xf32>
    %cst_4 = arith.constant dense<0.000000e+00> : vector<8xf32>
    %11 = vector.multi_reduction <add>, %1, %cst_4 [1] : vector<8x32xf32> to vector<8xf32>
    %12 = vector.shape_cast %11 : vector<8xf32> to vector<8x1xf32>
    %13 = arith.mulf %1, %0 : vector<8x32xf32>
    %cst_5 = arith.constant dense<0.000000e+00> : vector<8xf32>
    %14 = vector.multi_reduction <add>, %13, %cst_5 [1] : vector<8x32xf32> to vector<8xf32>
    %15 = vector.shape_cast %14 : vector<8xf32> to vector<8x1xf32>
    %16 = arith.mulf %10, %12 : vector<8x1xf32>
    %17 = arith.subf %16, %15 : vector<8x1xf32>
    %c8_i32 = arith.constant 8 : i32
    %18 = arith.muli %arg0, %c8_i32 : i32
    %19 = tpu.iota {dimensions = array<i32: 0>} : vector<8x1xi32>
    %20 = vector.broadcast %18 : i32 to vector<8x1xi32>
    %21 = arith.addi %20, %19 : vector<8x1xi32>
    %c8_i32_6 = arith.constant 8 : i32
    %22 = vector.broadcast %c8_i32_6 : i32 to vector<8x1xi32>
    %23 = arith.cmpi slt, %21, %22 : vector<8x1xi32>
    %cst_7 = arith.constant 0.000000e+00 : f32
    %24 = vector.broadcast %cst_7 : f32 to vector<8x1xf32>
    %25 = arith.select %23, %17, %24 : vector<8x1xi1>, vector<8x1xf32>
    %cst_8 = arith.constant dense<0.000000e+00> : vector<1xf32>
    %26 = vector.multi_reduction <add>, %25, %cst_8 [0] : vector<8x1xf32> to vector<1xf32>
    %27 = vector.shape_cast %26 : vector<1xf32> to vector<1x1xf32>
    %28 = vector.shape_cast %27 : vector<1x1xf32> to vector<1x1xf32>
    %29 = vector.broadcast %28 : vector<1x1xf32> to vector<1x128xf32>
    %c0_9 = arith.constant 0 : index
    %c0_10 = arith.constant 0 : index
    %30 = vector.load %arg3[%c0_9, %c0_10] : memref<1x128xf32, #tpu.memory_space<vmem>>, vector<1x128xf32>
    tpu.vector_store %arg3[%c0_9, %c0_10], %29 {strides = array<i32>} : memref<1x128xf32, #tpu.memory_space<vmem>>, vector<1x128xf32>,
    return
  }
  func.func @transform_0(%arg0: i32) -> (i32, i32) {
    %c0_i32 = arith.constant 0 : i32
    %c0_i32_0 = arith.constant 0 : i32
    return %arg0, %c0_i32 : i32, i32
  }
  func.func @transform_1(%arg0: i32) -> (i32, i32) {
    %c0_i32 = arith.constant 0 : i32
    %c0_i32_0 = arith.constant 0 : i32
    return %arg0, %c0_i32 : i32, i32
  }
  func.func @transform_2(%arg0: i32) -> (i32, i32) {
    %c0_i32 = arith.constant 0 : i32
    %c0_i32_0 = arith.constant 0 : i32
    return %arg0, %c0_i32 : i32, i32
  }
}

</mosaic_0001>

<bundles_post_ra>
// kernel: tpu_custom_call.1
= control target key start
LH: loop header
LB: loop body
LE: loop exit
PB: predicated region body
PF: predicated region fallthrough
CT: control target
= control target key end

     0   :  { %7 = vsyncpa [#allocation3], 0  ;;  %s223_s0 = inlined_call_operand.hbm [shape: f32[8,32], index: 0, kind: input, shape index: {}]   ;;  %s224_s1 = inlined_call_operand.hbm [shape: f32[8,32], index: 1, kind: input, shape index: {}]   ;;  %s225_s2 = inlined_call_operand.hbm [shape: f32[1,128], index: 2, kind: output, shape index: {}]  }
   0x1   :  { %8 = vsyncpa [#allocation6], 0 }
   0x2   :  { %9 = vsyncpa [#allocation4], 0  ;;  %s169_s9 = smov [#allocation2]   ;;  %s170_s11 = smov [#allocation5]  }
   0x3   :  { %s16_s10 = sshll.u32 %s169_s9, 4  ;;  %s26_s12 = sshll.u32 %s170_s11, 4  ;;  %s17_s10 = int_to_ptr.vmem [resolvable:$true] %s16_s10  ;;  %s27_s12 = int_to_ptr.vmem [resolvable:$true] %s26_s12 }
   0x4   :  { %s97_s15 = scalar_lea.hbm %s223_s0, 128 }
   0x5   :  { %p98_p0 = scmp.ne.s32.totalorder %s223_s0, %s97_s15  ;;  %p101_p1 = scmp.lt.u32.totalorder %s97_s15, %s223_s0 }
   0x7   :  { %p103_p2 = pnand %p101_p1, %p98_p0 }
   0x9   :  { %106 = shalt.err (!%p103_p2)
}
   0xa   :  { %s107_s20 = scalar_lea.vmem %s17_s10, 128  ;;  %p112_p4 = scmp.lt.s32.totalorder %s17_s10, %s17_s10 }
   0xb   :  { %p108_p3 = scmp.ne.s32.totalorder %s17_s10, %s107_s20  ;;  %p113_p5 = scmp.lt.s32.totalorder %s107_s20, %s107_s20 }
   0xd   :  { %p114_p6 = por %p113_p5, %p112_p4 }
   0xf   :  { %p115_p7 = pnand %p114_p6, %p108_p3 }
  0x11   :  { %118 = shalt.err (!%p115_p7)
}
  0x12   :  { %19 = dma.hbm_to_vmem [thread:$0]  %s223_s0, 128, %s17_s10, [#allocation3]  }
  0x13   :  { %s119_s25 = scalar_lea.hbm %s224_s1, 128 }
  0x14   :  { %p120_p8 = scmp.ne.s32.totalorder %s224_s1, %s119_s25  ;;  %p123_p9 = scmp.lt.u32.totalorder %s119_s25, %s224_s1 }
  0x16   :  { %p125_p10 = pnand %p123_p9, %p120_p8 }
  0x18   :  { %128 = shalt.err (!%p125_p10)
}
  0x19   :  { %s129_s30 = scalar_lea.vmem %s27_s12, 128  ;;  %p134_p12 = scmp.lt.s32.totalorder %s27_s12, %s27_s12 }
  0x1a   :  { %p130_p11 = scmp.ne.s32.totalorder %s27_s12, %s129_s30  ;;  %p135_p13 = scmp.lt.s32.totalorder %s129_s30, %s129_s30 }
  0x1c   :  { %p136_p0 = por %p135_p13, %p134_p12 }
  0x1e   :  { %p137_p1 = pnand %p136_p0, %p130_p11 }
  0x20   :  { %140 = shalt.err (!%p137_p1)
}
  0x21   :  { %29 = dma.hbm_to_vmem [thread:$0]  %s224_s1, 128, %s27_s12, [#allocation6]  }
  0x22   :  { %163 = dma.done.wait [#allocation3], 128  }
  0x23   :  { %164 = vsyncadd [#allocation3], 4294967168 }
  0x24   :  { %165 = dma.done.wait [#allocation6], 128  }
  0x25   :  { %166 = vsyncadd [#allocation6], 4294967168  ;;  %vm38_vm0 = vcmask 261120   ;;  %v36_v0 = vld [vmem:[#allocation2] sm:$0xff]  ;;  %v37_v2 = vld [vmem:[#allocation5] sm:$0xff]  ;;  %s171_s1 = smov [#allocation7]  }
  0x26   :  { %v39_v1 = vsel %vm38_vm0, %v36_v0, -inf  ;;  %v51_v3 = vsel %vm38_vm0, %v37_v2, 0.0  ;;  %v54_v4 = vmul.f32 %v37_v2, %v36_v0  ;;  %s80_s4 = sshll.u32 %s171_s1, 4  ;;  %s81_s4 = int_to_ptr.vmem [resolvable:$true] %s80_s4 }
  0x27   :  { %40 = vmax.xlane.f32.xlu0 %v39_v1  ;;  %52 = vadd.xlane.f32.xlu1 %v51_v3  ;;  %s141_s5 = scalar_lea.vmem %s81_s4, 16  ;;  %s145_s6 = scalar_lea.vmem %s81_s4, 32 }
  0x28   :  { %v55_v5 = vsel %vm38_vm0, %v54_v4, 0.0  ;;  %p142_p2 = scmp.ne.s32.totalorder %s81_s4, %s141_s5  ;;  %p146_p3 = scmp.lt.s32.totalorder %s81_s4, %s81_s4 }
  0x29   :  { %p147_p4 = scmp.lt.s32.totalorder %s145_s6, %s141_s5 }
  0x2b   :  { %56 = vadd.xlane.f32.xlu1 %v55_v5  ;;  %p148_p5 = por %p147_p4, %p146_p3 }
  0x2d   :  { %p149_p6 = pnand %p148_p5, %p142_p2 }
  0xb4   :  { %v41_v6 = vpop.xlane.xlu0 %40  ;;  %v53_v12 = vpop.xlane.xlu1 %52 }
  0xb5   :  { %v42_v7 = vsub.f32 %v36_v0, %v41_v6 }
  0xb7   :  { %v43_v8 = vmul.f32 1.442695, %v42_v7 }
  0xb8   :  { %v57_v16 = vpop.xlane.xlu1 %56 }
  0xb9   :  { %93 = vpow2.f32 %v43_v8 }
  0xc3   :  { %v94_v9 = vpop.eup %93 }
  0xc4   :  { %v45_v10 = vsel %vm38_vm0, %v94_v9, 0.0 }
  0xc5   :  { %46 = vadd.xlane.f32.xlu0 %v45_v10 }
 0x152   :  { %v47_v11 = vpop.xlane.xlu0 %46 }
 0x153   :  { %95 = vlog2.f32 %v47_v11 }
 0x15d   :  { %v96_v13 = vpop.eup %95 }
 0x15e   :  { %v49_v14 = vmul.f32 0.6931472, %v96_v13 }
 0x160   :  { %v50_v15 = vadd.f32 %v49_v14, %v41_v6 }
 0x162   :  { %v58_v17 = vmul.f32 %v53_v12, %v50_v15 }
 0x164   :  { %v59_v18 = vsub.f32 %v58_v17, %v57_v16 }
 0x166   :  { %v67_v19 = vrot.slane %v59_v18, 4 }
 0x168   :  { %v68_v20 = vadd.f32 %v67_v19, %v59_v18 }
 0x16a   :  { %v69_v21 = vrot.slane %v68_v20, 2 }
 0x16c   :  { %v70_v22 = vadd.f32 %v69_v21, %v68_v20 }
 0x16e   :  { %v71_v23 = vrot.slane %v70_v22, 1 }
 0x170   :  { %v72_v24 = vadd.f32 %v71_v23, %v70_v22 }
 0x172   :  { %73 = vst [vmem:[#allocation7] sm:$0x1] %v72_v24 }
 0x173   :  { %152 = shalt.err (!%p149_p6)
}
 0x174   :  { %s153_s9 = scalar_lea.hbm %s225_s2, 16 }
 0x175   :  { %p154_p7 = scmp.ne.s32.totalorder %s225_s2, %s153_s9  ;;  %p157_p8 = scmp.lt.u32.totalorder %s153_s9, %s225_s2 }
 0x177   :  { %p159_p9 = pnand %p157_p8, %p154_p7 }
 0x179   :  { %162 = shalt.err (!%p159_p9)
}
 0x17a   :  { %83 = dma.vmem_to_hbm [thread:$0]  %s81_s4, 16, %s225_s2, [#allocation4]  }
 0x17b   :  { %167 = dma.done.wait [#allocation4], 16  }
 0x17c   :  { %168 = vsyncadd [#allocation4], 4294967280 }
 0x17d   :  { %87 = vsyncpa [#allocation3], 1 }
 0x17e   :  { %88 = vsyncpa [#allocation6], 1 }
 0x17f   :  { %89 = vsyncpa [#allocation4], 1 }

</bundles_post_ra>
